<compile_context>
chip_gen: v7x
topology: tpu7x:2x2x1
jax: 0.10.0
libtpu: 0.0.40
codegen_flags: <defaults>
</compile_context>

<pallas_src>
import functools

import jax
import jax.numpy as jnp
from jax.experimental import pallas as pl
from jax.experimental.pallas import tpu as pltpu

HIDDEN = 1000        # logical hidden width from the PyTorch module
HIDDEN_PAD = 1024    # padded to a multiple of the 128-lane vreg width
CLASS_PAD = 128      # num_class padded to a full lane group (dense vst)


def _round_up(x, m):
    return (x + m - 1) // m * m


def _pick_m_tile(batch):
    # v6e/v7x MXU is 256 wide -> 256-row tiles for big batches (keeps >= 2 tiles so
    # both v7x TensorCores stay busy); small batches use <=128 (full v5e MXU fill,
    # no wasted padded rows at tiny batch).
    if batch >= 512:
        return 256
    return min(128, _round_up(batch, 8))


# --------------------------------------------------------------------------------
# Kernels
# --------------------------------------------------------------------------------

def fcn_fused_kernel(x_ref, w12_ref, b12_ref, w3_ref, b3_ref, out_ref, *,
                     m_tile, valid_rows):
    """Per-tile MLP (folded Linear -> ReLU -> Linear) + fused dim-0 softmax epilogue.

    out_ref is the WHOLE (b_pad, CLASS_PAD) logits block (constant index_map), kept
    VMEM-resident across grid steps; softmax over dim=0 runs in place on the last step.
    """
    i = pl.program_id(0)

    # Folded first two linears: h = ReLU(x @ (w1@w2) + (b1@w2 + b2))
    h = jnp.dot(x_ref[...], w12_ref[...], preferred_element_type=jnp.float32)
    h = jnp.maximum(h + b12_ref[...], 0.0)

    # last_layer: Linear(1000, num_class)  (class dim zero-padded to CLASS_PAD)
    logits = jnp.dot(h.astype(jnp.bfloat16), w3_ref[...],
                     preferred_element_type=jnp.float32) + b3_ref[...]

    row0 = pl.multiple_of(i * m_tile, m_tile)
    out_ref[pl.ds(row0, m_tile), :] = logits

    @pl.when(i == pl.num_programs(0) - 1)
    def _():
        z = out_ref[...]
        row = jax.lax.broadcasted_iota(jnp.int32, z.shape, 0)
        valid = row < valid_rows
        z = jnp.where(valid, z, -jnp.inf)
        m = jnp.max(z, axis=0, keepdims=True)
        e = jnp.where(valid, jnp.exp(z - m), 0.0)
        s = jnp.sum(e, axis=0, keepdims=True)
        out_ref[...] = e / s           # exact division: columns sum to 1


def fcn_mlp_kernel(x_ref, w12_ref, b12_ref, w3_ref, b3_ref, logits_ref):
    """Fallback (large batch): one batch tile -> streamed f32 logits tile."""
    h = jnp.dot(x_ref[...], w12_ref[...], preferred_element_type=jnp.float32)
    h = jnp.maximum(h + b12_ref[...], 0.0)
    logits_ref[...] = jnp.dot(h.astype(jnp.bfloat16), w3_ref[...],
                              preferred_element_type=jnp.float32) + b3_ref[...]


def softmax_stats_kernel(logits_ref, m_ref, l_ref, *, m_tile, valid_rows):
    """Fallback pass 1: per-column running max / rescaled sum-of-exp over batch tiles."""
    i = pl.program_id(0)

    @pl.when(i == 0)
    def _():
        m_ref[...] = jnp.full_like(m_ref, -jnp.inf)
        l_ref[...] = jnp.zeros_like(l_ref)

    z = logits_ref[...]
    row = jax.lax.broadcasted_iota(jnp.int32, z.shape, 0) + i * m_tile
    valid = row < valid_rows
    z = jnp.where(valid, z, -jnp.inf)

    m_old = m_ref[...]
    m_new = jnp.maximum(m_old, jnp.max(z, axis=0, keepdims=True))
    l_ref[...] = l_ref[...] * jnp.exp(m_old - m_new) + jnp.sum(
        jnp.where(valid, jnp.exp(z - m_new), 0.0), axis=0, keepdims=True)
    m_ref[...] = m_new


def softmax_norm_kernel(logits_ref, m_ref, l_ref, out_ref, *, m_tile, valid_rows):
    """Fallback pass 2: normalize each batch tile with the column stats."""
    i = pl.program_id(0)
    z = logits_ref[...]
    row = jax.lax.broadcasted_iota(jnp.int32, z.shape, 0) + i * m_tile
    e = jnp.where(row < valid_rows, jnp.exp(z - m_ref[...]), 0.0)
    out_ref[...] = e / l_ref[...]


# --------------------------------------------------------------------------------
# Parameter preparation (offline fold + lane padding + bf16 cast)
# --------------------------------------------------------------------------------

def init_params(key, dimension, num_class=2):
    # Deterministic synthetic init (f32, logical PyTorch shapes).
    k1, k2, k3, k4, k5, k6 = jax.random.split(key, 6)
    w1 = jax.random.normal(k1, (dimension, HIDDEN), jnp.float32) * (1.0 / jnp.sqrt(float(dimension)))
    b1 = jax.random.normal(k2, (1, HIDDEN), jnp.float32) * 0.01
    w2 = jax.random.normal(k3, (HIDDEN, HIDDEN), jnp.float32) * (1.0 / jnp.sqrt(float(HIDDEN)))
    b2 = jax.random.normal(k4, (1, HIDDEN), jnp.float32) * 0.01
    w3 = jax.random.normal(k5, (HIDDEN, num_class), jnp.float32) * (1.0 / jnp.sqrt(float(HIDDEN)))
    b3 = jax.random.normal(k6, (1, num_class), jnp.float32) * 0.01
    return (w1, b1, w2, b2, w3, b3)


def prepare_params(params_f32):
    """Fold w1@w2 / b1@w2+b2 in f32, zero-pad to lane-aligned shapes, cast weights to bf16."""
    w1, b1, w2, b2, w3, b3 = params_f32
    d, num_class = w1.shape[0], w3.shape[1]
    d_pad = _round_up(d, 128)

    # No activation between first_layer and the first mid Linear in the PyTorch module:
    #   (x @ w1 + b1) @ w2 + b2 == x @ (w1 @ w2) + (b1 @ w2 + b2)
    w12 = w1 @ w2                     # fold in f32 BEFORE the bf16 cast
    b12 = b1 @ w2 + b2

    w12p = jnp.zeros((d_pad, HIDDEN_PAD), jnp.float32).at[:d, :HIDDEN].set(w12).astype(jnp.bfloat16)
    b12p = jnp.zeros((1, HIDDEN_PAD), jnp.float32).at[:, :HIDDEN].set(b12)
    w3p = jnp.zeros((HIDDEN_PAD, CLASS_PAD), jnp.float32).at[:HIDDEN, :num_class].set(w3).astype(jnp.bfloat16)
    b3p = jnp.zeros((1, CLASS_PAD), jnp.float32).at[:, :num_class].set(b3)
    return (w12p, b12p, w3p, b3p)


# --------------------------------------------------------------------------------
# Forward wrapper
# --------------------------------------------------------------------------------

def fcn_forward(x, padded_params, num_class):
    w12, b12, w3, b3 = padded_params
    batch, dim = x.shape
    d_pad = w12.shape[0]

    m_tile = _pick_m_tile(batch)
    b_pad = _round_up(batch, m_tile)
    n_tiles = b_pad // m_tile

    # Pad activations to lane/tile-aligned shape and cast to bf16 in the wrapper
    # (halves the only per-tile streamed input).
    x_pad = jnp.zeros((b_pad, d_pad), jnp.bfloat16).at[:batch, :dim].set(x.astype(jnp.bfloat16))

    const = lambda i: (0, 0)  # constant index_map: weights DMA'd once, VMEM resident

    # Scoped VMEM limit derived from the resident footprint (x2 for double buffering),
    # clamped to 48 MiB so it stays inside v7x's 64 MiB physical VMEM.
    weight_bytes = w12.size * 2 + w3.size * 2 + (b12.size + b3.size) * 4
    io_bytes = 2 * (m_tile * d_pad * 2 + m_tile * CLASS_PAD * 4) + b_pad * CLASS_PAD * 4
    vmem_limit = int(min(max(2 * weight_bytes + io_bytes + (8 << 20), 32 << 20), 48 << 20))

    mlp_in_specs = [
        pl.BlockSpec((m_tile, d_pad), lambda i: (i, 0)),     # x tiles stream
        pl.BlockSpec((d_pad, HIDDEN_PAD), const),            # w12 (folded)
        pl.BlockSpec((1, HIDDEN_PAD), const),                # b12
        pl.BlockSpec((HIDDEN_PAD, CLASS_PAD), const),        # w3
        pl.BlockSpec((1, CLASS_PAD), const),                 # b3
    ]

    # Fused single-launch path whenever the whole logits block fits comfortably in VMEM.
    if b_pad * CLASS_PAD * 4 <= (8 << 20):
        out_pad = pl.pallas_call(
            functools.partial(fcn_fused_kernel, m_tile=m_tile, valid_rows=batch),
            out_shape=jax.ShapeDtypeStruct((b_pad, CLASS_PAD), jnp.float32),
            grid_spec=pltpu.PrefetchScalarGridSpec(
                num_scalar_prefetch=0,
                grid=(n_tiles,),
                in_specs=mlp_in_specs,
                out_specs=pl.BlockSpec((b_pad, CLASS_PAD), const),  # whole-logits accumulator
            ),
            compiler_params=pltpu.CompilerParams(
                dimension_semantics=("arbitrary",),   # resident output block -> arbitrary
                vmem_limit_bytes=vmem_limit,
            ),
        )(x_pad, w12, b12, w3, b3)
        return out_pad[:batch, :num_class]

    # ---- large-batch fallback: streamed logits + scalable grid-tiled dim-0 softmax ----
    logits = pl.pallas_call(
        fcn_mlp_kernel,
        out_shape=jax.ShapeDtypeStruct((b_pad, CLASS_PAD), jnp.float32),
        grid_spec=pltpu.PrefetchScalarGridSpec(
            num_scalar_prefetch=0,
            grid=(n_tiles,),
            in_specs=mlp_in_specs,
            out_specs=pl.BlockSpec((m_tile, CLASS_PAD), lambda i: (i, 0)),
        ),
        compiler_params=pltpu.CompilerParams(
            dimension_semantics=("parallel",),    # batch tiles shard across v7x TCs
            vmem_limit_bytes=vmem_limit,
        ),
    )(x_pad, w12, b12, w3, b3)

    # Pass 1: per-column running max / sum-of-exp (flash-style rescaling).
    m_col, l_col = pl.pallas_call(
        functools.partial(softmax_stats_kernel, m_tile=m_tile, valid_rows=batch),
        out_shape=(jax.ShapeDtypeStruct((1, CLASS_PAD), jnp.float32),
                   jax.ShapeDtypeStruct((1, CLASS_PAD), jnp.float32)),
        grid_spec=pltpu.PrefetchScalarGridSpec(
            num_scalar_prefetch=0,
            grid=(n_tiles,),
            in_specs=[pl.BlockSpec((m_tile, CLASS_PAD), lambda i: (i, 0))],
            out_specs=(pl.BlockSpec((1, CLASS_PAD), const),
                       pl.BlockSpec((1, CLASS_PAD), const)),
        ),
        compiler_params=pltpu.CompilerParams(
            dimension_semantics=("arbitrary",),
            vmem_limit_bytes=32 << 20,
        ),
    )(logits)

    # Pass 2: normalize each tile with the column stats.
    probs = pl.pallas_call(
        functools.partial(softmax_norm_kernel, m_tile=m_tile, valid_rows=batch),
        out_shape=jax.ShapeDtypeStruct((b_pad, CLASS_PAD), jnp.float32),
        grid_spec=pltpu.PrefetchScalarGridSpec(
            num_scalar_prefetch=0,
            grid=(n_tiles,),
            in_specs=[pl.BlockSpec((m_tile, CLASS_PAD), lambda i: (i, 0)),
                      pl.BlockSpec((1, CLASS_PAD), const),
                      pl.BlockSpec((1, CLASS_PAD), const)],
            out_specs=pl.BlockSpec((m_tile, CLASS_PAD), lambda i: (i, 0)),
        ),
        compiler_params=pltpu.CompilerParams(
            dimension_semantics=("parallel",),
            vmem_limit_bytes=32 << 20,
        ),
    )(logits, m_col, l_col)

    return probs[:batch, :num_class]


# --------------------------------------------------------------------------------
# References
# --------------------------------------------------------------------------------

def fcn_reference_f32(x, params_f32):
    # Pure-JAX f32 reference (original PyTorch semantics).
    w1, b1, w2, b2, w3, b3 = params_f32
    h = x @ w1 + b1
    h = jnp.maximum(h @ w2 + b2, 0.0)
    return jax.nn.softmax(h @ w3 + b3, axis=0)


def fcn_reference_matched(x, padded_params, num_class):
    # Reference matching the kernel's folded bf16-weight / f32-accumulate math.
    w12, b12, w3, b3 = padded_params
    batch, dim = x.shape
    d_pad = w12.shape[0]
    xp = jnp.zeros((batch, d_pad), jnp.bfloat16).at[:, :dim].set(x.astype(jnp.bfloat16))
    h = jnp.maximum(jnp.dot(xp, w12, preferred_element_type=jnp.float32) + b12, 0.0)
    logits = jnp.dot(h.astype(jnp.bfloat16), w3, preferred_element_type=jnp.float32) + b3
    return jax.nn.softmax(logits[:, :num_class], axis=0)


if __name__ == "__main__":
    batch, dimension, num_class = 8, 32, 2

    key = jax.random.PRNGKey(0)
    kx, kp = jax.random.split(key)
    x = jax.random.normal(kx, (batch, dimension), jnp.float32)

    params_f32 = init_params(kp, dimension, num_class)
    params = prepare_params(params_f32)

    out = jax.block_until_ready(fcn_forward(x, params, num_class))
    assert out.shape == (batch, num_class)

    # Tight check against a reference using the same folded-bf16/f32 math as the kernel.
    ref_matched = fcn_reference_matched(x, params, num_class)
    assert jnp.allclose(out, ref_matched, atol=2e-3, rtol=2e-3), "mismatch vs matched reference"

    # Loose check against the full-f32 PyTorch-equivalent reference.
    ref_f32 = fcn_reference_f32(x, params_f32)
    assert jnp.allclose(out, ref_f32, atol=5e-2, rtol=5e-2), "mismatch vs f32 reference"

    # Softmax over dim=0 with exact division -> each class column sums to 1.
    assert jnp.allclose(out.sum(axis=0), jnp.ones((num_class,), jnp.float32), atol=1e-4)

    print("KERNEL_OK")
</pallas_src>

<mosaic_0001>
module attributes {stable_mosaic.version = 11 : i64} {
  func.func @fcn_fused_kernel(%arg0: i32, %arg1: memref<8x128xbf16, #tpu.memory_space<vmem>>, %arg2: memref<128x1024xbf16, #tpu.memory_space<vmem>>, %arg3: memref<1x1024xf32, #tpu.memory_space<vmem>>, %arg4: memref<1024x128xbf16, #tpu.memory_space<vmem>>, %arg5: memref<1x128xf32, #tpu.memory_space<vmem>>, %arg6: memref<8x128xf32, #tpu.memory_space<vmem>>) attributes {dimension_semantics = [#tpu.dimension_semantics<arbitrary>], iteration_bounds = array<i64: 1>, scalar_prefetch = 0 : i64, scratch_operands = 0 : i64, tpu.core_type = #tpu.core_type<tc>, window_params = [{transform_indices = @transform_0, window_bounds = array<i64: 8, 128>}, {pipeline_mode = #tpu.pipeline_mode<synchronous>, transform_indices = @transform_1, window_bounds = array<i64: 128, 1024>}, {pipeline_mode = #tpu.pipeline_mode<synchronous>, transform_indices = @transform_2, window_bounds = array<i64: 1, 1024>}, {pipeline_mode = #tpu.pipeline_mode<synchronous>, transform_indices = @transform_3, window_bounds = array<i64: 1024, 128>}, {pipeline_mode = #tpu.pipeline_mode<synchronous>, transform_indices = @transform_4, window_bounds = array<i64: 1, 128>}, {pipeline_mode = #tpu.pipeline_mode<synchronous>, transform_indices = @transform_5, window_bounds = array<i64: 8, 128>}]} {
    %c0 = arith.constant 0 : index
    %c0_0 = arith.constant 0 : index
    %0 = vector.load %arg1[%c0, %c0_0] : memref<8x128xbf16, #tpu.memory_space<vmem>>, vector<8x128xbf16>
    %c0_1 = arith.constant 0 : index
    %c0_2 = arith.constant 0 : index
    %1 = vector.load %arg2[%c0_1, %c0_2] : memref<128x1024xbf16, #tpu.memory_space<vmem>>, vector<128x1024xbf16>
    %cst = arith.constant dense<0.000000e+00> : vector<8x1024xf32>
    %2 = tpu.matmul %0, %1, %cst {dimension_numbers = #tpu.dot_dimension_numbers<[1], [0], [0], [1], [0, 0, 1, 1], [], []>} : vector<8x128xbf16>, vector<128x1024xbf16>, vector<8x1024xf32> -> vector<8x1024xf32>
    %c0_3 = arith.constant 0 : index
    %c0_4 = arith.constant 0 : index
    %3 = vector.load %arg3[%c0_3, %c0_4] : memref<1x1024xf32, #tpu.memory_space<vmem>>, vector<1x1024xf32>
    %4 = vector.broadcast %3 : vector<1x1024xf32> to vector<8x1024xf32>
    %5 = arith.addf %2, %4 : vector<8x1024xf32>
    %cst_5 = arith.constant 0.000000e+00 : f32
    %6 = vector.broadcast %cst_5 : f32 to vector<8x1024xf32>
    %7 = arith.maximumf %5, %6 : vector<8x1024xf32>
    %8 = arith.truncf %7 : vector<8x1024xf32> to vector<8x1024xbf16>
    %c0_6 = arith.constant 0 : index
    %c0_7 = arith.constant 0 : index
    %9 = vector.load %arg4[%c0_6, %c0_7] : memref<1024x128xbf16, #tpu.memory_space<vmem>>, vector<1024x128xbf16>
    %cst_8 = arith.constant dense<0.000000e+00> : vector<8x128xf32>
    %10 = tpu.matmul %8, %9, %cst_8 {dimension_numbers = #tpu.dot_dimension_numbers<[1], [0], [0], [1], [0, 0, 1, 1], [], []>} : vector<8x1024xbf16>, vector<1024x128xbf16>, vector<8x128xf32> -> vector<8x128xf32>
    %c0_9 = arith.constant 0 : index
    %c0_10 = arith.constant 0 : index
    %11 = vector.load %arg5[%c0_9, %c0_10] : memref<1x128xf32, #tpu.memory_space<vmem>>, vector<1x128xf32>
    %12 = vector.broadcast %11 : vector<1x128xf32> to vector<8x128xf32>
    %13 = arith.addf %10, %12 : vector<8x128xf32>
    %c8_i32 = arith.constant 8 : i32
    %14 = arith.muli %arg0, %c8_i32 : i32
    %15 = tpu.assume_multiple %14, 8 : i32
    %16 = arith.index_cast %15 : i32 to index
    %c0_11 = arith.constant 0 : index
    %17 = vector.load %arg6[%16, %c0_11] : memref<8x128xf32, #tpu.memory_space<vmem>>, vector<8x128xf32>
    tpu.vector_store %arg6[%16, %c0_11], %13 {strides = array<i32>} : memref<8x128xf32, #tpu.memory_space<vmem>>, vector<8x128xf32>,
    %c0_i32 = arith.constant 0 : i32
    %18 = arith.cmpi eq, %arg0, %c0_i32 : i32
    %19 = arith.extui %18 : i1 to i32
    %c0_i32_12 = arith.constant 0 : i32
    %20 = arith.cmpi ne, %19, %c0_i32_12 : i32
    scf.if %20 {
      %c0_13 = arith.constant 0 : index
      %c0_14 = arith.constant 0 : index
      %21 = vector.load %arg6[%c0_13, %c0_14] : memref<8x128xf32, #tpu.memory_space<vmem>>, vector<8x128xf32>
      %22 = tpu.iota {dimensions = array<i32: 0>} : vector<8x128xi32>
      %c8_i32_15 = arith.constant 8 : i32
      %23 = vector.broadcast %c8_i32_15 : i32 to vector<8x128xi32>
      %24 = arith.cmpi slt, %22, %23 : vector<8x128xi32>
      %cst_16 = arith.constant 0xFF800000 : f32
      %25 = vector.broadcast %cst_16 : f32 to vector<8x128xf32>
      %26 = arith.select %24, %21, %25 : vector<8x128xi1>, vector<8x128xf32>
      %cst_17 = arith.constant dense<0xFF800000> : vector<128xf32>
      %27 = vector.multi_reduction <maximumf>, %26, %cst_17 [0] : vector<8x128xf32> to vector<128xf32>
      %28 = vector.shape_cast %27 : vector<128xf32> to vector<1x128xf32>
      %29 = vector.broadcast %28 : vector<1x128xf32> to vector<8x128xf32>
      %30 = arith.subf %26, %29 : vector<8x128xf32>
      %31 = math.exp %30 : vector<8x128xf32>
      %cst_18 = arith.constant 0.000000e+00 : f32
      %32 = vector.broadcast %cst_18 : f32 to vector<8x128xf32>
      %33 = arith.select %24, %31, %32 : vector<8x128xi1>, vector<8x128xf32>
      %cst_19 = arith.constant dense<0.000000e+00> : vector<128xf32>
      %34 = vector.multi_reduction <add>, %33, %cst_19 [0] : vector<8x128xf32> to vector<128xf32>
      %35 = vector.shape_cast %34 : vector<128xf32> to vector<1x128xf32>
      %36 = vector.broadcast %35 : vector<1x128xf32> to vector<8x128xf32>
      %37 = arith.divf %33, %36 : vector<8x128xf32>
      %c0_20 = arith.constant 0 : index
      %c0_21 = arith.constant 0 : index
      %38 = vector.load %arg6[%c0_20, %c0_21] : memref<8x128xf32, #tpu.memory_space<vmem>>, vector<8x128xf32>
      tpu.vector_store %arg6[%c0_20, %c0_21], %37 {strides = array<i32>} : memref<8x128xf32, #tpu.memory_space<vmem>>, vector<8x128xf32>,
    } else {
    }
    return
  }
  func.func @transform_0(%arg0: i32) -> (i32, i32) {
    %c0_i32 = arith.constant 0 : i32
    %c0_i32_0 = arith.constant 0 : i32
    return %arg0, %c0_i32 : i32, i32
  }
  func.func @transform_1(%arg0: i32) -> (i32, i32) {
    %c0_i32 = arith.constant 0 : i32
    %c0_i32_0 = arith.constant 0 : i32
    %c0_i32_1 = arith.constant 0 : i32
    return %c0_i32, %c0_i32_0 : i32, i32
  }
  func.func @transform_2(%arg0: i32) -> (i32, i32) {
    %c0_i32 = arith.constant 0 : i32
    %c0_i32_0 = arith.constant 0 : i32
    %c0_i32_1 = arith.constant 0 : i32
    return %c0_i32, %c0_i32_0 : i32, i32
  }
  func.func @transform_3(%arg0: i32) -> (i32, i32) {
    %c0_i32 = arith.constant 0 : i32
    %c0_i32_0 = arith.constant 0 : i32
    %c0_i32_1 = arith.constant 0 : i32
    return %c0_i32, %c0_i32_0 : i32, i32
  }
  func.func @transform_4(%arg0: i32) -> (i32, i32) {
    %c0_i32 = arith.constant 0 : i32
    %c0_i32_0 = arith.constant 0 : i32
    %c0_i32_1 = arith.constant 0 : i32
    return %c0_i32, %c0_i32_0 : i32, i32
  }
  func.func @transform_5(%arg0: i32) -> (i32, i32) {
    %c0_i32 = arith.constant 0 : i32
    %c0_i32_0 = arith.constant 0 : i32
    %c0_i32_1 = arith.constant 0 : i32
    return %c0_i32, %c0_i32_0 : i32, i32
  }
}

</mosaic_0001>

<bundles_post_ra>
// kernel: tpu_custom_call.1
= control target key start
LH: loop header
LB: loop body
LE: loop exit
PB: predicated region body
PF: predicated region fallthrough
CT: control target
= control target key end

     0   :  { %10 = vsyncpa [#allocation3], 0  ;;  %s1953_s0 = inlined_call_operand.hbm [shape: bf16[8,128], index: 0, kind: input, shape index: {}]   ;;  %s1954_s1 = inlined_call_operand.hbm [shape: bf16[128,1024], index: 1, kind: input, shape index: {}]   ;;  %s1955_s2 = inlined_call_operand.hbm [shape: f32[1,1024], index: 2, kind: input, shape index: {}]   ;;  %s1956_s3 = inlined_call_operand.hbm [shape: bf16[1024,128], index: 3, kind: input, shape index: {}]   ;;  %s1957_s4 = inlined_call_operand.vmem [shape: f32[1,128], index: 4, kind: input, shape index: {}]   ;;  %s1958_s5 = inlined_call_operand.hbm [shape: f32[8,128], index: 5, kind: output, shape index: {}]  }
   0x1   :  { %11 = vsyncpa [#allocation6], 0 }
   0x2   :  { %12 = vsyncpa [#allocation9], 0 }
   0x3   :  { %13 = vsyncpa [#allocation4], 0  ;;  %s1820_s18 = smov [#allocation5]   ;;  %s1702_s22 = scalar_lea.hbm %s1954_s1, 8192 }
   0x4   :  { %s29_s19 = sshll.u32 %s1820_s18, 4  ;;  %p1703_p0 = scmp.ne.s32.totalorder %s1954_s1, %s1702_s22  ;;  %s30_s19 = int_to_ptr.vmem [resolvable:$true] %s29_s19 }
   0x5   :  { %p1706_p1 = scmp.lt.u32.totalorder %s1702_s22, %s1954_s1 }
   0x7   :  { %p1708_p2 = pnand %p1706_p1, %p1703_p0 }
   0x9   :  { %1711 = shalt.err (!%p1708_p2)
}
   0xa   :  { %s1712_s27 = scalar_lea.vmem %s30_s19, 8192  ;;  %p1717_p4 = scmp.lt.s32.totalorder %s30_s19, %s30_s19 }
   0xb   :  { %p1713_p3 = scmp.ne.s32.totalorder %s30_s19, %s1712_s27  ;;  %p1718_p5 = scmp.lt.s32.totalorder %s1712_s27, %s1712_s27 }
   0xd   :  { %p1719_p6 = por %p1718_p5, %p1717_p4 }
   0xf   :  { %p1720_p7 = pnand %p1719_p6, %p1713_p3 }
  0x11   :  { %1723 = shalt.err (!%p1720_p7)
}
  0x12   :  { %s1821_s28 = smov 512   ;;  %s1822_s29 = smov 32  }
  0x13   :  { %35 = dma.hbm_to_vmem [thread:$0]  %s1954_s1, 8192, %s30_s19, [#allocation6], %s1821_s28, %s1821_s28, %s1822_s29  }
  0x14   :  { %s1823_s7 = smov [#allocation2]   ;;  %s1824_s9 = smov [#allocation7]  }
  0x15   :  { %s20_s8 = sshll.u32 %s1823_s7, 4  ;;  %s42_s10 = sshll.u32 %s1824_s9, 4  ;;  %s21_s8 = int_to_ptr.vmem [resolvable:$true] %s20_s8  ;;  %s43_s10 = int_to_ptr.vmem [resolvable:$true] %s42_s10 }
  0x16   :  { %s1724_s13 = scalar_lea.hbm %s1953_s0, 64 }
  0x17   :  { %p1725_p8 = scmp.ne.s32.totalorder %s1953_s0, %s1724_s13  ;;  %p1728_p9 = scmp.lt.u32.totalorder %s1724_s13, %s1953_s0 }
  0x19   :  { %p1730_p10 = pnand %p1728_p9, %p1725_p8 }
  0x1b   :  { %1733 = shalt.err (!%p1730_p10)
}
  0x1c   :  { %s1734_s1 = scalar_lea.vmem %s21_s8, 64  ;;  %p1739_p12 = scmp.lt.s32.totalorder %s21_s8, %s21_s8 }
  0x1d   :  { %p1735_p11 = scmp.ne.s32.totalorder %s21_s8, %s1734_s1  ;;  %p1740_p13 = scmp.lt.s32.totalorder %s1734_s1, %s1734_s1 }
  0x1f   :  { %p1741_p0 = por %p1740_p13, %p1739_p12 }
  0x21   :  { %p1742_p1 = pnand %p1741_p0, %p1735_p11 }
  0x23   :  { %1745 = shalt.err (!%p1742_p1)
}
  0x24   :  { %23 = dma.hbm_to_vmem [thread:$0]  %s1953_s0, 64, %s21_s8, [#allocation3]  }
  0x25   :  { %s1746_s22 = scalar_lea.hbm %s1955_s2, 128 }
  0x26   :  { %p1747_p2 = scmp.ne.s32.totalorder %s1955_s2, %s1746_s22  ;;  %p1750_p3 = scmp.lt.u32.totalorder %s1746_s22, %s1955_s2 }
  0x28   :  { %p1752_p4 = pnand %p1750_p3, %p1747_p2 }
  0x2a   :  { %1755 = shalt.err (!%p1752_p4)
}
  0x2b   :  { %s1756_s27 = scalar_lea.vmem %s43_s10, 128  ;;  %p1761_p6 = scmp.lt.s32.totalorder %s43_s10, %s43_s10 }
  0x2c   :  { %p1757_p5 = scmp.ne.s32.totalorder %s43_s10, %s1756_s27  ;;  %p1762_p7 = scmp.lt.s32.totalorder %s1756_s27, %s1756_s27 }
  0x2e   :  { %p1763_p8 = por %p1762_p7, %p1761_p6 }
  0x30   :  { %p1764_p9 = pnand %p1763_p8, %p1757_p5 }
  0x32   :  { %1767 = shalt.err (!%p1764_p9)
}
  0x33   :  { %45 = dma.hbm_to_vmem [thread:$0]  %s1955_s2, 128, %s43_s10, [#allocation6]  }
  0x34   :  { %s1825_s29 = smov [#allocation8]   ;;  %s1768_s8 = scalar_lea.hbm %s1956_s3, 8192 }
  0x35   :  { %s51_s30 = sshll.u32 %s1825_s29, 4  ;;  %p1769_p10 = scmp.ne.s32.totalorder %s1956_s3, %s1768_s8  ;;  %s52_s30 = int_to_ptr.vmem [resolvable:$true] %s51_s30 }
  0x36   :  { %p1772_p11 = scmp.lt.u32.totalorder %s1768_s8, %s1956_s3 }
  0x38   :  { %p1774_p12 = pnand %p1772_p11, %p1769_p10 }
  0x3a   :  { %1777 = shalt.err (!%p1774_p12)
}
  0x3b   :  { %s1778_s14 = scalar_lea.vmem %s52_s30, 8192  ;;  %p1783_p0 = scmp.lt.s32.totalorder %s52_s30, %s52_s30 }
  0x3c   :  { %p1779_p13 = scmp.ne.s32.totalorder %s52_s30, %s1778_s14  ;;  %p1784_p1 = scmp.lt.s32.totalorder %s1778_s14, %s1778_s14 }
  0x3e   :  { %p1785_p2 = por %p1784_p1, %p1783_p0 }
  0x40   :  { %p1786_p3 = pnand %p1785_p2, %p1779_p13 }
  0x42   :  { %1789 = shalt.err (!%p1786_p3)
}
  0x43   :  { %s1826_s2 = smov 64   ;;  %s1827_s10 = smov 4  }
  0x44   :  { %57 = dma.hbm_to_vmem [thread:$0]  %s1956_s3, 8192, %s52_s30, [#allocation9], %s1826_s2, %s1826_s2, %s1827_s10  }
  0x45   :  { %1812 = dma.done.wait [#allocation3], 64  }
  0x46   :  { %1813 = vsyncadd [#allocation3], 4294967232 }
  0x47   :  { %1814 = dma.done.wait [#allocation6], 8320  }
  0x48   :  { %1815 = vsyncadd [#allocation6], 4294958976 }
  0x49   :  { %1816 = dma.done.wait [#allocation9], 8192  }
  0x4a   :  { %1817 = vsyncadd [#allocation9], 4294959104  ;;  %v1828_v0 = vmov 0   ;;  %v74_v1 = vld [vmem:[#allocation5] sm:$0xff]  ;;  %v75_v3 = vld [vmem:[#allocation5 + $0x8] sm:$0xff] }
  0x4b   :  { %532 = vmatprep.mubr.bf16.mxu0 %v1828_v0  ;;  %573 = vmatprep.mubr.bf16.mxu1 %v1828_v0  ;;  %v78_v2 = vld [vmem:[#allocation5 + $0x20] sm:$0xff]  ;;  %v79_v5 = vld [vmem:[#allocation5 + $0x28] sm:$0xff]  ;;  %v76_v60 = vld [vmem:[#allocation5 + $0x10] sm:$0xff] }
  0x4c   :  { %v1408_v4 = vcombine.high %v74_v1, %v78_v2  ;;  %v1407_v6 = vcombine.low %v74_v1, %v78_v2  ;;  %v82_v7 = vld [vmem:[#allocation5 + $0x40] sm:$0xff]  ;;  %v1410_v9 = vcombine.high %v75_v3, %v79_v5  ;;  %v1409_v10 = vcombine.low %v75_v3, %v79_v5  ;;  %v83_v12 = vld [vmem:[#allocation5 + $0x48] sm:$0xff]  ;;  %v80_v63 = vld [vmem:[#allocation5 + $0x30] sm:$0xff] }
  0x4d   :  { %v86_v8 = vld [vmem:[#allocation5 + $0x60] sm:$0xff]  ;;  %v87_v13 = vld [vmem:[#allocation5 + $0x68] sm:$0xff]  ;;  %v77_v2 = vld [vmem:[#allocation5 + $0x18] sm:$0xff] }
  0x4e   :  { %v1416_v11 = vcombine.high %v82_v7, %v86_v8  ;;  %v90_v14 = vld [vmem:[#allocation5 + $0x80] sm:$0xff]  ;;  %500 = vmatprep.subr.bf16.mxu0 %v1408_v4  ;;  %v1418_v15 = vcombine.high %v83_v12, %v87_v13  ;;  %v91_v17 = vld [vmem:[#allocation5 + $0x88] sm:$0xff]  ;;  %541 = vmatprep.subr.bf16.mxu1 %v1410_v9  ;;  %v1415_v19 = vcombine.low %v82_v7, %v86_v8  ;;  %v81_v3 = vld [vmem:[#allocation5 + $0x38] sm:$0xff] }
  0x4f   :  { %v94_v16 = vld [vmem:[#allocation5 + $0xa0] sm:$0xff]  ;;  %v95_v18 = vld [vmem:[#allocation5 + $0xa8] sm:$0xff]  ;;  %501 = vmatpush1.bf16.msra.mxu0 %v1407_v6  ;;  %542 = vmatpush1.bf16.msra.mxu1 %v1409_v10  ;;  %v1417_v20 = vcombine.low %v83_v12, %v87_v13  ;;  %v84_v5 = vld [vmem:[#allocation5 + $0x50] sm:$0xff]  ;;  %v1412_v7 = vcombine.high %v76_v60, %v80_v63  ;;  %v1414_v10 = vcombine.high %v77_v2, %v81_v3 }
  0x50   :  { %502 = vmatprep.subr.bf16.mxu0 %v1416_v11  ;;  %v1424_v21 = vcombine.high %v90_v14, %v94_v16  ;;  %543 = vmatprep.subr.bf16.mxu1 %v1418_v15  ;;  %v1426_v22 = vcombine.high %v91_v17, %v95_v18  ;;  %v98_v23 = vld [vmem:[#allocation5 + $0xc0] sm:$0xff]  ;;  %v99_v25 = vld [vmem:[#allocation5 + $0xc8] sm:$0xff]  ;;  %v1423_v27 = vcombine.low %v90_v14, %v94_v16  ;;  %v88_v8 = vld [vmem:[#allocation5 + $0x70] sm:$0xff] }
  0x51   :  { %v102_v24 = vld [vmem:[#allocation5 + $0xe0] sm:$0xff]  ;;  %v103_v26 = vld [vmem:[#allocation5 + $0xe8] sm:$0xff]  ;;  %v1425_v28 = vcombine.low %v91_v17, %v95_v18  ;;  %v1910_v9 = vld [vmem:[#allocation2] sm:$0xf]  ;;  %v1411_v13 = vcombine.low %v76_v60, %v80_v63  ;;  %v1413_v15 = vcombine.low %v77_v2, %v81_v3  ;;  %v1420_v16 = vcombine.high %v84_v5, %v88_v8 }
  0x52   :  { %v1432_v29 = vcombine.high %v98_v23, %v102_v24  ;;  %v1434_v30 = vcombine.high %v99_v25, %v103_v26  ;;  %v106_v31 = vld [vmem:[#allocation5 + $0x100] sm:$0xff]  ;;  %v107_v33 = vld [vmem:[#allocation5 + $0x108] sm:$0xff]  ;;  %v1431_v35 = vcombine.low %v98_v23, %v102_v24  ;;  %v1433_v36 = vcombine.low %v99_v25, %v103_v26  ;;  %v85_v11 = vld [vmem:[#allocation5 + $0x58] sm:$0xff] }
  0x53   :  { %503 = vmatpush1.bf16.msra.mxu0 %v1415_v19  ;;  %544 = vmatpush1.bf16.msra.mxu1 %v1417_v20  ;;  %v110_v32 = vld [vmem:[#allocation5 + $0x120] sm:$0xff]  ;;  %v111_v34 = vld [vmem:[#allocation5 + $0x128] sm:$0xff]  ;;  %v89_v12 = vld [vmem:[#allocation5 + $0x78] sm:$0xff] }
  0x54   :  { %504 = vmatprep.subr.bf16.mxu0 %v1424_v21  ;;  %545 = vmatprep.subr.bf16.mxu1 %v1426_v22  ;;  %v1440_v37 = vcombine.high %v106_v31, %v110_v32  ;;  %v1442_v38 = vcombine.high %v107_v33, %v111_v34  ;;  %v114_v39 = vld [vmem:[#allocation5 + $0x140] sm:$0xff]  ;;  %v115_v41 = vld [vmem:[#allocation5 + $0x148] sm:$0xff]  ;;  %v1439_v43 = vcombine.low %v106_v31, %v110_v32  ;;  %v92_v14 = vld [vmem:[#allocation5 + $0x90] sm:$0xff] }
  0x55   :  { %v118_v40 = vld [vmem:[#allocation5 + $0x160] sm:$0xff]  ;;  %v119_v42 = vld [vmem:[#allocation5 + $0x168] sm:$0xff]  ;;  %v1441_v44 = vcombine.low %v107_v33, %v111_v34  ;;  %v96_v17 = vld [vmem:[#allocation5 + $0xb0] sm:$0xff]  ;;  %v1422_v18 = vcombine.high %v85_v11, %v89_v12  ;;  %v1419_v21 = vcombine.low %v84_v5, %v88_v8  ;;  %v1421_v23 = vcombine.low %v85_v11, %v89_v12 }
  0x56   :  { %v1448_v45 = vcombine.high %v114_v39, %v118_v40  ;;  %v1450_v46 = vcombine.high %v115_v41, %v119_v42  ;;  %v122_v47 = vld [vmem:[#allocation5 + $0x180] sm:$0xff]  ;;  %v123_v49 = vld [vmem:[#allocation5 + $0x188] sm:$0xff]  ;;  %v1447_v51 = vcombine.low %v114_v39, %v118_v40  ;;  %v1449_v52 = vcombine.low %v115_v41, %v119_v42  ;;  %v93_v19 = vld [vmem:[#allocation5 + $0x98] sm:$0xff] }
  0x57   :  { %505 = vmatpush1.bf16.msra.mxu0 %v1423_v27  ;;  %546 = vmatpush1.bf16.msra.mxu1 %v1425_v28  ;;  %v126_v48 = vld [vmem:[#allocation5 + $0x1a0] sm:$0xff]  ;;  %v127_v50 = vld [vmem:[#allocation5 + $0x1a8] sm:$0xff]  ;;  %v97_v20 = vld [vmem:[#allocation5 + $0xb8] sm:$0xff]  ;;  %v1428_v24 = vcombine.high %v92_v14, %v96_v17 }
  0x58   :  { %506 = vmatprep.subr.bf16.mxu0 %v1432_v29  ;;  %547 = vmatprep.subr.bf16.mxu1 %v1434_v30  ;;  %v1456_v53 = vcombine.high %v122_v47, %v126_v48  ;;  %v130_v54 = vld [vmem:[#allocation5 + $0x1c0] sm:$0xff]  ;;  %v1458_v56 = vcombine.high %v123_v49, %v127_v50  ;;  %v131_v57 = vld [vmem:[#allocation5 + $0x1c8] sm:$0xff]  ;;  %v1455_v59 = vcombine.low %v122_v47, %v126_v48  ;;  %v100_v22 = vld [vmem:[#allocation5 + $0xd0] sm:$0xff] }
  0x59   :  { %v134_v55 = vld [vmem:[#allocation5 + $0x1e0] sm:$0xff]  ;;  %v135_v58 = vld [vmem:[#allocation5 + $0x1e8] sm:$0xff]  ;;  %v1457_v61 = vcombine.low %v123_v49, %v127_v50  ;;  %v104_v25 = vld [vmem:[#allocation5 + $0xf0] sm:$0xff]  ;;  %v1430_v26 = vcombine.high %v93_v19, %v97_v20  ;;  %v1427_v29 = vcombine.low %v92_v14, %v96_v17  ;;  %v1429_v31 = vcombine.low %v93_v19, %v97_v20 }
  0x5a   :  { %v1464_v62 = vcombine.high %v130_v54, %v134_v55  ;;  %v1466_v1 = vcombine.high %v131_v57, %v135_v58  ;;  %v1463_v4 = vcombine.low %v130_v54, %v134_v55  ;;  %v1465_v6 = vcombine.low %v131_v57, %v135_v58  ;;  %v101_v27 = vld [vmem:[#allocation5 + $0xd8] sm:$0xff]  ;;  %v108_v30 = vld [vmem:[#allocation5 + $0x110] sm:$0xff]  ;;  %v1635_v3 = vld [vmem:[#allocation8 + $0xc0] sm:$0xff]  }
  0x5b   :  { %507 = vmatpush1.bf16.msra.mxu0 %v1431_v35  ;;  %548 = vmatpush1.bf16.msra.mxu1 %v1433_v36  ;;  %v105_v28 = vld [vmem:[#allocation5 + $0xf8] sm:$0xff]  ;;  %v1436_v32 = vcombine.high %v100_v22, %v104_v25  ;;  %v112_v33 = vld [vmem:[#allocation5 + $0x130] sm:$0xff]  ;;  %v1636_v5 = vld [vmem:[#allocation8] sm:$0xff]  }
  0x5c   :  { %508 = vmatprep.subr.bf16.mxu0 %v1440_v37  ;;  %549 = vmatprep.subr.bf16.mxu1 %v1442_v38  ;;  %v1438_v34 = vcombine.high %v101_v27, %v105_v28  ;;  %v109_v35 = vld [vmem:[#allocation5 + $0x118] sm:$0xff]  ;;  %v1435_v37 = vcombine.low %v100_v22, %v104_v25  ;;  %v116_v38 = vld [vmem:[#allocation5 + $0x150] sm:$0xff]  ;;  %v1437_v40 = vcombine.low %v101_v27, %v105_v28  ;;  %v1647_v17 = vld [vmem:[#allocation8 + $0xd8] sm:$0xff]  }
  0x5d   :  { %v113_v36 = vld [vmem:[#allocation5 + $0x138] sm:$0xff]  ;;  %v120_v39 = vld [vmem:[#allocation5 + $0x170] sm:$0xff]  ;;  %v1649_v19 = vld [vmem:[#allocation8 + $0x98] sm:$0xff]  }
  0x5e   :  { %v117_v41 = vld [vmem:[#allocation5 + $0x158] sm:$0xff]  ;;  %v1445_v47 = vcombine.low %v109_v35, %v113_v36  ;;  %v1452_v48 = vcombine.high %v116_v38, %v120_v39  ;;  %v136_v54 = vld [vmem:[#allocation5 + $0x1f0] sm:$0xff]  ;;  %v1650_v20 = vld [vmem:[#allocation8 + $0x60] sm:$0xff]  }
  0x5f   :  { %509 = vmatpush1.bf16.msra.mxu0 %v1439_v43  ;;  %550 = vmatpush1.bf16.msra.mxu1 %v1441_v44  ;;  %v121_v42 = vld [vmem:[#allocation5 + $0x178] sm:$0xff]  ;;  %v1446_v43 = vcombine.high %v109_v35, %v113_v36  ;;  %v1443_v44 = vcombine.low %v108_v30, %v112_v33  ;;  %v1639_v8 = vld [vmem:[#allocation8 + $0xc8] sm:$0xff]   ;;  %v1653_v22 = vld [vmem:[#allocation8 + $0xa0] sm:$0xff]  }
  0x60   :  { %510 = vmatprep.subr.bf16.mxu0 %v1448_v45  ;;  %551 = vmatprep.subr.bf16.mxu1 %v1450_v46  ;;  %v124_v45 = vld [vmem:[#allocation5 + $0x190] sm:$0xff]  ;;  %v125_v49 = vld [vmem:[#allocation5 + $0x198] sm:$0xff]  ;;  %v1453_v55 = vcombine.low %v117_v41, %v121_v42  ;;  %v1666_v35 = vld [vmem:[#allocation8 + $0x140] sm:$0xff]  }
  0x61   :  { %v128_v46 = vld [vmem:[#allocation5 + $0x1b0] sm:$0xff]  ;;  %v129_v50 = vld [vmem:[#allocation5 + $0x1b8] sm:$0xff]  ;;  %v1667_v36 = vld [vmem:[#allocation8 + $0x1c0] sm:$0xff]  }
  0x62   :  { %v133_v57 = vld [vmem:[#allocation5 + $0x1d8] sm:$0xff]  ;;  %v1459_v60 = vcombine.low %v124_v45, %v128_v46  ;;  %v1641_v11 = vld [vmem:[#allocation8 + $0x88] sm:$0xff]  }
  0x63   :  { %511 = vmatpush1.bf16.msra.mxu0 %v1447_v51  ;;  %552 = vmatpush1.bf16.msra.mxu1 %v1449_v52  ;;  %v1454_v51 = vcombine.high %v117_v41, %v121_v42  ;;  %v1451_v52 = vcombine.low %v116_v38, %v120_v39  ;;  %v137_v58 = vld [vmem:[#allocation5 + $0x1f8] sm:$0xff]  ;;  %v1656_v25 = vld [vmem:[#allocation8 + $0x28] sm:$0xff]  }
  0x64   :  { %512 = vmatprep.subr.bf16.mxu0 %v1456_v53  ;;  %553 = vmatprep.subr.bf16.mxu1 %v1458_v56  ;;  %v132_v53 = vld [vmem:[#allocation5 + $0x1d0] sm:$0xff]  ;;  %v1460_v56 = vcombine.high %v124_v45, %v128_v46  ;;  %v1470_v63 = vcombine.high %v133_v57, %v137_v58  ;;  %v1642_v12 = vld [vmem:[#allocation8 + $0x50] sm:$0xff]  }
  0x65   :  { %v1467_v2 = vcombine.low %v132_v53, %v136_v54  ;;  %v1644_v14 = vld [vmem:[#allocation8 + $0x10] sm:$0xff]  }
  0x66   :  { %v1658_v27 = vld [vmem:[#allocation8 + $0x70] sm:$0xff]  }
  0x67   :  { %513 = vmatpush1.bf16.msra.mxu0 %v1455_v59  ;;  %554 = vmatpush1.bf16.msra.mxu1 %v1457_v61  ;;  %v1462_v59 = vcombine.high %v125_v49, %v129_v50  ;;  %v1461_v61 = vcombine.low %v125_v49, %v129_v50  ;;  %v1659_v28 = vld [vmem:[#allocation8 + $0xf0] sm:$0xff]  }
  0x68   :  { %514 = vmatprep.subr.bf16.mxu0 %v1464_v62  ;;  %555 = vmatprep.subr.bf16.mxu1 %v1466_v1  ;;  %v1468_v62 = vcombine.high %v132_v53, %v136_v54  ;;  %v1634_v1 = vld [vmem:[#allocation8 + $0x40] sm:$0xff]  }
  0x6b   :  { %515 = vmatpush1.bf16.msra.mxu0 %v1463_v4  ;;  %556 = vmatpush1.bf16.msra.mxu1 %v1465_v6  ;;  %v1469_v4 = vcombine.low %v133_v57, %v137_v58  ;;  %v1637_v6 = vld [vmem:[#allocation8 + $0x80] sm:$0xff]  }
  0x6c   :  { %582 = vmatprep.subr.bf16.mxu0 %v1412_v7  ;;  %623 = vmatprep.subr.bf16.mxu1 %v1414_v10  ;;  %v1638_v7 = vld [vmem:[#allocation8 + $0x48] sm:$0xff]  }
  0x6d   :  { %v1640_v10 = vld [vmem:[#allocation8 + $0x8] sm:$0xff]  }
  0x6e   :  { %533 = vmatmul.mubr.bf16.vlgmr.msra.gmra.mrb[0].mxu0 %v1910_v9  ;;  %574 = vmatmul.mubr.bf16.vlgmr.msra.gmra.mrb[0].mxu1 %v1910_v9 }
  0x6f   :  { %583 = vmatpush1.bf16.msra.mxu0 %v1411_v13  ;;  %624 = vmatpush1.bf16.msra.mxu1 %v1413_v15  ;;  %v1643_v13 = vld [vmem:[#allocation8 + $0xd0] sm:$0xff]  }
  0x70   :  { %584 = vmatprep.subr.bf16.mxu0 %v1420_v16  ;;  %625 = vmatprep.subr.bf16.mxu1 %v1422_v18  ;;  %v1645_v15 = vld [vmem:[#allocation8 + $0x90] sm:$0xff]   ;;  %v1646_v16 = vld [vmem:[#allocation8 + $0x58] sm:$0xff]  }
  0x71   :  { %614 = vmatprep.mubr.bf16.mxu0 %v1828_v0  ;;  %655 = vmatprep.mubr.bf16.mxu1 %v1828_v0  ;;  %v1444_v0 = vcombine.high %v108_v30, %v112_v33  ;;  %v1648_v18 = vld [vmem:[#allocation8 + $0x18] sm:$0xff]   ;;  %v1661_v30 = vld [vmem:[#allocation8 + $0xb0] sm:$0xff]  }
  0x72   :  { %v1664_v33 = vld [vmem:[#allocation8 + $0x38] sm:$0xff]  }
  0x73   :  { %585 = vmatpush1.bf16.msra.mxu0 %v1419_v21  ;;  %626 = vmatpush1.bf16.msra.mxu1 %v1421_v23  ;;  %v1652_v21 = vld [vmem:[#allocation8 + $0x20] sm:$0xff]   ;;  %v1654_v23 = vld [vmem:[#allocation8 + $0x68] sm:$0xff]  }
  0x74   :  { %586 = vmatprep.subr.bf16.mxu0 %v1428_v24  ;;  %627 = vmatprep.subr.bf16.mxu1 %v1430_v26  ;;  %v1655_v24 = vld [vmem:[#allocation8 + $0xe8] sm:$0xff]  }
  0x75   :  { %v1657_v26 = vld [vmem:[#allocation8 + $0xa8] sm:$0xff]  }
  0x77   :  { %587 = vmatpush1.bf16.msra.mxu0 %v1427_v29  ;;  %628 = vmatpush1.bf16.msra.mxu1 %v1429_v31  ;;  %v1660_v29 = vld [vmem:[#allocation8 + $0x30] sm:$0xff]   ;;  %v1662_v31 = vld [vmem:[#allocation8 + $0x78] sm:$0xff]  }
  0x78   :  { %588 = vmatprep.subr.bf16.mxu0 %v1436_v32  ;;  %629 = vmatprep.subr.bf16.mxu1 %v1438_v34  ;;  %v1663_v32 = vld [vmem:[#allocation8 + $0xf8] sm:$0xff]  }
  0x79   :  { %v1665_v34 = vld [vmem:[#allocation8 + $0xb8] sm:$0xff]  }
  0x7b   :  { %589 = vmatpush1.bf16.msra.mxu0 %v1435_v37  ;;  %630 = vmatpush1.bf16.msra.mxu1 %v1437_v40  ;;  %v140_v37 = vlaneseq  ;;  %v1921_v40 = vld [vmem:[#allocation7] sm:$0xff] }
  0x7c   :  { %590 = vmatprep.subr.bf16.mxu0 %v1444_v0  ;;  %631 = vmatprep.subr.bf16.mxu1 %v1446_v43 }
  0x7d   :  { %v1918_v38 = vshrl.u32 %v140_v37, 7  ;;  %v1693_v37 = vld [vmem:[#allocation8 + $0x1b0] sm:$0xff]  }
  0x7f   :  { %591 = vmatpush1.bf16.msra.mxu0 %v1443_v44  ;;  %632 = vmatpush1.bf16.msra.mxu1 %v1445_v47  ;;  %v142_v39 = vsub.s32 0, %v1918_v38  ;;  %v150_v0 = vsub.s32 2, %v1918_v38  ;;  %v146_v41 = vsub.s32 1, %v1918_v38  ;;  %v154_v42 = vsub.s32 3, %v1918_v38 }
  0x80   :  { %592 = vmatprep.subr.bf16.mxu0 %v1452_v48  ;;  %633 = vmatprep.subr.bf16.mxu1 %v1454_v51 }
  0x81   :  { %v143_v43 = vrot.slane %v1921_v40, %v142_v39  ;;  %v151_v44 = vrot.slane %v1921_v40, %v150_v0  ;;  %v147_v45 = vrot.slane %v1921_v40, %v146_v41  ;;  %v155_v46 = vrot.slane %v1921_v40, %v154_v42  ;;  %v1694_v39 = vld [vmem:[#allocation8 + $0x178] sm:$0xff]  }
  0x83   :  { %593 = vmatpush1.bf16.msra.mxu0 %v1451_v52  ;;  %634 = vmatpush1.bf16.msra.mxu1 %v1453_v55 }
  0x84   :  { %594 = vmatprep.subr.bf16.mxu0 %v1460_v56  ;;  %635 = vmatprep.subr.bf16.mxu1 %v1462_v59 }
  0x87   :  { %595 = vmatpush1.bf16.msra.mxu0 %v1459_v60  ;;  %636 = vmatpush1.bf16.msra.mxu1 %v1461_v61 }
  0x88   :  { %596 = vmatprep.subr.bf16.mxu0 %v1468_v62  ;;  %637 = vmatprep.subr.bf16.mxu1 %v1470_v63 }
  0x8b   :  { %597 = vmatpush1.bf16.msra.mxu0 %v1467_v2  ;;  %638 = vmatpush1.bf16.msra.mxu1 %v1469_v4 }
  0x8c   :  { %1536 = vmatprep.subr.bf16.mxu0 %v1634_v1  ;;  %1558 = vmatprep.subr.bf16.mxu1 %v1635_v3  ;;  %v1668_v3 = vld [vmem:[#allocation8 + $0x100] sm:$0xff]  }
  0x8e   :  { %615 = vmatmul.mubr.bf16.vlgmr.msra.gmra.mrb[4].mxu0 %v1910_v9  ;;  %656 = vmatmul.mubr.bf16.vlgmr.msra.gmra.mrb[4].mxu1 %v1910_v9  ;;  %v1651_v9 = vld [vmem:[#allocation8 + $0xe0] sm:$0xff]  }
  0x8f   :  { %1537 = vmatpush3.bf16.msra.mxu0 %v1636_v5  ;;  %1559 = vmatpush3.bf16.msra.mxu1 %v1637_v6  ;;  %v1669_v5 = vld [vmem:[#allocation8 + $0x180] sm:$0xff]   ;;  %v1670_v6 = vld [vmem:[#allocation8 + $0x148] sm:$0xff]  }
  0x90   :  { %1538 = vmatprep.subr.bf16.mxu0 %v1638_v7  ;;  %1560 = vmatprep.subr.bf16.mxu1 %v1639_v8  ;;  %v1671_v7 = vld [vmem:[#allocation8 + $0x1c8] sm:$0xff]  }
  0x91   :  { %v1672_v8 = vld [vmem:[#allocation8 + $0x108] sm:$0xff]  }
  0x93   :  { %1539 = vmatpush3.bf16.msra.mxu0 %v1640_v10  ;;  %1561 = vmatpush3.bf16.msra.mxu1 %v1641_v11  ;;  %v1673_v10 = vld [vmem:[#allocation8 + $0x188] sm:$0xff]   ;;  %v1674_v11 = vld [vmem:[#allocation8 + $0x150] sm:$0xff]  }
  0x94   :  { %1540 = vmatprep.subr.bf16.mxu0 %v1642_v12  ;;  %1562 = vmatprep.subr.bf16.mxu1 %v1643_v13  ;;  %v1675_v12 = vld [vmem:[#allocation8 + $0x1d0] sm:$0xff]  }
  0x95   :  { %v1676_v13 = vld [vmem:[#allocation8 + $0x110] sm:$0xff]  }
  0x97   :  { %1541 = vmatpush3.bf16.msra.mxu0 %v1644_v14  ;;  %1563 = vmatpush3.bf16.msra.mxu1 %v1645_v15  ;;  %v1677_v14 = vld [vmem:[#allocation8 + $0x190] sm:$0xff]   ;;  %v1678_v15 = vld [vmem:[#allocation8 + $0x158] sm:$0xff]  }
  0x98   :  { %1542 = vmatprep.subr.bf16.mxu0 %v1646_v16  ;;  %1564 = vmatprep.subr.bf16.mxu1 %v1647_v17  ;;  %v1679_v16 = vld [vmem:[#allocation8 + $0x1d8] sm:$0xff]  }
  0x99   :  { %v1680_v17 = vld [vmem:[#allocation8 + $0x118] sm:$0xff]  }
  0x9b   :  { %1543 = vmatpush3.bf16.msra.mxu0 %v1648_v18  ;;  %1565 = vmatpush3.bf16.msra.mxu1 %v1649_v19  ;;  %v1681_v18 = vld [vmem:[#allocation8 + $0x198] sm:$0xff]   ;;  %v1682_v19 = vld [vmem:[#allocation8 + $0x160] sm:$0xff]  }
  0x9c   :  { %1544 = vmatprep.subr.bf16.mxu0 %v1650_v20  ;;  %1566 = vmatprep.subr.bf16.mxu1 %v1651_v9  ;;  %v1683_v20 = vld [vmem:[#allocation8 + $0x1e0] sm:$0xff]  }
  0x9d   :  { %v1684_v9 = vld [vmem:[#allocation8 + $0x120] sm:$0xff]  }
  0x9f   :  { %1545 = vmatpush3.bf16.msra.mxu0 %v1652_v21  ;;  %1567 = vmatpush3.bf16.msra.mxu1 %v1653_v22  ;;  %v1685_v21 = vld [vmem:[#allocation8 + $0x1a0] sm:$0xff]   ;;  %v1686_v22 = vld [vmem:[#allocation8 + $0x168] sm:$0xff]  }
  0xa0   :  { %1546 = vmatprep.subr.bf16.mxu0 %v1654_v23  ;;  %1568 = vmatprep.subr.bf16.mxu1 %v1655_v24  ;;  %v1687_v23 = vld [vmem:[#allocation8 + $0x1e8] sm:$0xff]   ;;  %v158_v24 = vsub.s32 4, %v1918_v38 }
  0xa3   :  { %1547 = vmatpush3.bf16.msra.mxu0 %v1656_v25  ;;  %1569 = vmatpush3.bf16.msra.mxu1 %v1657_v26  ;;  %v1688_v25 = vld [vmem:[#allocation8 + $0x128] sm:$0xff]   ;;  %v166_v26 = vsub.s32 6, %v1918_v38 }
  0xa4   :  { %1548 = vmatprep.subr.bf16.mxu0 %v1658_v27  ;;  %1570 = vmatprep.subr.bf16.mxu1 %v1659_v28  ;;  %v162_v27 = vsub.s32 5, %v1918_v38  ;;  %v1689_v28 = vld [vmem:[#allocation8 + $0x1a8] sm:$0xff]  }
  0xa7   :  { %1549 = vmatpush3.bf16.msra.mxu0 %v1660_v29  ;;  %1571 = vmatpush3.bf16.msra.mxu1 %v1661_v30  ;;  %v170_v29 = vsub.s32 7, %v1918_v38  ;;  %v1690_v30 = vld [vmem:[#allocation8 + $0x170] sm:$0xff]   ;;  %v1695_v38 = vld [vmem:[#allocation8 + $0x1f8] sm:$0xff]  }
  0xa8   :  { %1550 = vmatprep.subr.bf16.mxu0 %v1662_v31  ;;  %1572 = vmatprep.subr.bf16.mxu1 %v1663_v32  ;;  %v1691_v31 = vld [vmem:[#allocation8 + $0x1f0] sm:$0xff]   ;;  %v159_v32 = vrot.slane %v1921_v40, %v158_v24 }
  0xab   :  { %1551 = vmatpush3.bf16.msra.mxu0 %v1664_v33  ;;  %1573 = vmatpush3.bf16.msra.mxu1 %v1665_v34  ;;  %v167_v33 = vrot.slane %v1921_v40, %v166_v26  ;;  %v163_v34 = vrot.slane %v1921_v40, %v162_v27 }
  0xac   :  { %1580 = vmatprep.subr.bf16.mxu0 %v1666_v35  ;;  %1602 = vmatprep.subr.bf16.mxu1 %v1667_v36  ;;  %v1692_v35 = vld [vmem:[#allocation8 + $0x130] sm:$0xff]   ;;  %v171_v36 = vrot.slane %v1921_v40, %v170_v29 }
 0x141   :  { %v534_v47 = vpop.f32.mrb[0].mxu0  ;;  %v575_v49 = vpop.f32.mrb[0].mxu1 }
 0x142   :  { %v535_v48 = vadd.f32 %v534_v47, %v143_v43  ;;  %v536_v50 = vpop.f32.mrb[1].mxu0  ;;  %v576_v51 = vadd.f32 %v575_v49, %v151_v44  ;;  %v577_v53 = vpop.f32.mrb[1].mxu1 }
 0x143   :  { %v537_v52 = vadd.f32 %v536_v50, %v147_v45  ;;  %v538_v54 = vpop.f32.mrb[2].mxu0  ;;  %v578_v56 = vadd.f32 %v577_v53, %v155_v46  ;;  %v579_v57 = vpop.f32.mrb[2].mxu1 }
 0x144   :  { %v664_v55 = vmax.f32 %v535_v48, 0.0  ;;  %v539_v58 = vpop.f32.mrb[3].mxu0  ;;  %v666_v59 = vmax.f32 %v576_v51, 0.0  ;;  %v580_v61 = vpop.f32.mrb[3].mxu1  ;;  %v1696_v48 = vld [vmem:[#allocation8 + $0x138] sm:$0xff]  }
 0x145   :  { %v665_v60 = vmax.f32 %v537_v52, 0.0  ;;  %v667_v63 = vmax.f32 %v578_v56, 0.0  ;;  %v1697_v52 = vld [vmem:[#allocation8 + $0x1b8] sm:$0xff]  }
 0x146   :  { %v672_v62 = vpack.c.bf16 %v664_v55, %v664_v55  ;;  %v674_v1 = vpack.c.bf16 %v666_v59, %v666_v59 }
 0x147   :  { %v673_v2 = vpack.c.bf16 %v665_v60, %v665_v60  ;;  %v675_v4 = vpack.c.bf16 %v667_v63, %v667_v63  ;;  %v1471_v63 = vld [vmem:[%s1957_s4] ss:$0 sm:$0xff]  ;;  %s1829_s4 = smov [#allocation10]  }
 0x148   :  { %s1396_s1 = sshll.u32 %s1829_s4, 4  ;;  %s1397_s1 = int_to_ptr.vmem [resolvable:$true] %s1396_s1 }
 0x149   :  { %1231 = vmatprep.mubr.bf16.mxu0 %v673_v2  ;;  %1271 = vmatprep.mubr.bf16.mxu1 %v675_v4  ;;  %s1790_s18 = scalar_lea.vmem %s1397_s1, 128  ;;  %p1795_p5 = scmp.lt.s32.totalorder %s1397_s1, %s1397_s1 }
 0x14a   :  { %1232 = vmatmul.mubr.bf16.vlgmr.msra.gmra.mrb[8].mxu0 %v672_v62  ;;  %1272 = vmatmul.mubr.bf16.vlgmr.msra.gmra.mrb[8].mxu1 %v674_v1  ;;  %p1791_p4 = scmp.ne.s32.totalorder %s1397_s1, %s1790_s18  ;;  %p1796_p6 = scmp.lt.s32.totalorder %s1790_s18, %s1790_s18 }
 0x14b   :  { %1581 = vmatpush3.bf16.msra.mxu0 %v1668_v3  ;;  %1603 = vmatpush3.bf16.msra.mxu1 %v1669_v5 }
 0x14c   :  { %1582 = vmatprep.subr.bf16.mxu0 %v1670_v6  ;;  %1604 = vmatprep.subr.bf16.mxu1 %v1671_v7  ;;  %p1797_p7 = por %p1796_p6, %p1795_p5 }
 0x14e   :  { %p1798_p8 = pnand %p1797_p7, %p1791_p4 }
 0x14f   :  { %1583 = vmatpush3.bf16.msra.mxu0 %v1672_v8  ;;  %1605 = vmatpush3.bf16.msra.mxu1 %v1673_v10 }
 0x150   :  { %1584 = vmatprep.subr.bf16.mxu0 %v1674_v11  ;;  %1606 = vmatprep.subr.bf16.mxu1 %v1675_v12 }
 0x153   :  { %1585 = vmatpush3.bf16.msra.mxu0 %v1676_v13  ;;  %1607 = vmatpush3.bf16.msra.mxu1 %v1677_v14 }
 0x154   :  { %1586 = vmatprep.subr.bf16.mxu0 %v1678_v15  ;;  %1608 = vmatprep.subr.bf16.mxu1 %v1679_v16 }
 0x157   :  { %1587 = vmatpush3.bf16.msra.mxu0 %v1680_v17  ;;  %1609 = vmatpush3.bf16.msra.mxu1 %v1681_v18 }
 0x158   :  { %1588 = vmatprep.subr.bf16.mxu0 %v1682_v19  ;;  %1610 = vmatprep.subr.bf16.mxu1 %v1683_v20 }
 0x15b   :  { %1589 = vmatpush3.bf16.msra.mxu0 %v1684_v9  ;;  %1611 = vmatpush3.bf16.msra.mxu1 %v1685_v21 }
 0x15c   :  { %1590 = vmatprep.subr.bf16.mxu0 %v1686_v22  ;;  %1612 = vmatprep.subr.bf16.mxu1 %v1687_v23 }
 0x15f   :  { %1591 = vmatpush3.bf16.msra.mxu0 %v1688_v25  ;;  %1613 = vmatpush3.bf16.msra.mxu1 %v1689_v28 }
 0x160   :  { %1592 = vmatprep.subr.bf16.mxu0 %v1690_v30  ;;  %1614 = vmatprep.subr.bf16.mxu1 %v1691_v31 }
 0x161   :  { %v616_v0 = vpop.f32.mrb[4].mxu0  ;;  %v657_v42 = vpop.f32.mrb[4].mxu1 }
 0x162   :  { %v617_v41 = vadd.f32 %v616_v0, %v159_v32  ;;  %v618_v43 = vpop.f32.mrb[5].mxu0  ;;  %v658_v44 = vadd.f32 %v657_v42, %v167_v33  ;;  %v659_v46 = vpop.f32.mrb[5].mxu1 }
 0x163   :  { %v619_v45 = vadd.f32 %v618_v43, %v163_v34  ;;  %v620_v47 = vpop.f32.mrb[6].mxu0  ;;  %1593 = vmatpush3.bf16.msra.mxu0 %v1692_v35  ;;  %v660_v50 = vadd.f32 %v659_v46, %v171_v36  ;;  %v661_v51 = vpop.f32.mrb[6].mxu1  ;;  %1615 = vmatpush3.bf16.msra.mxu1 %v1693_v37 }
 0x164   :  { %v668_v49 = vmax.f32 %v617_v41, 0.0  ;;  %v621_v40 = vpop.f32.mrb[7].mxu0  ;;  %1594 = vmatprep.subr.bf16.mxu0 %v1694_v39  ;;  %v670_v53 = vmax.f32 %v658_v44, 0.0  ;;  %v662_v55 = vpop.f32.mrb[7].mxu1  ;;  %1616 = vmatprep.subr.bf16.mxu1 %v1695_v38 }
 0x165   :  { %v669_v54 = vmax.f32 %v619_v45, 0.0  ;;  %v671_v56 = vmax.f32 %v660_v50, 0.0 }
 0x166   :  { %v678_v57 = vpack.c.bf16 %v670_v53, %v670_v53  ;;  %v676_v59 = vpack.c.bf16 %v668_v49, %v668_v49 }
 0x167   :  { %v677_v58 = vpack.c.bf16 %v669_v54, %v669_v54  ;;  %1595 = vmatpush3.bf16.msra.mxu0 %v1696_v48  ;;  %v679_v60 = vpack.c.bf16 %v671_v56, %v671_v56  ;;  %1617 = vmatpush3.bf16.msra.mxu1 %v1697_v52 }
 0x169   :  { %1311 = vmatprep.mubr.bf16.mxu0 %v677_v58  ;;  %1351 = vmatprep.mubr.bf16.mxu1 %v679_v60 }
 0x16a   :  { %1312 = vmatmul.mubr.bf16.vlgmr.msra.gmra.mrb[12].mxu0 %v676_v59  ;;  %1352 = vmatmul.mubr.bf16.vlgmr.msra.gmra.mrb[12].mxu1 %v678_v57 }
 0x21d   :  { %v1552_v61 = vpop.f32.mrb[8].mxu0  ;;  %v1574_v62 = vpop.f32.mrb[8].mxu1 }
 0x21e   :  { %v1553_v1 = vpop.f32.mrb[9].mxu0  ;;  %v1575_v3 = vpop.f32.mrb[9].mxu1 }
 0x21f   :  { %v1554_v2 = vadd.f32 %v1553_v1, %v1552_v61  ;;  %v1555_v4 = vpop.f32.mrb[10].mxu0  ;;  %v1576_v5 = vadd.f32 %v1575_v3, %v1574_v62  ;;  %v1577_v6 = vpop.f32.mrb[10].mxu1 }
 0x220   :  { %v1556_v7 = vpop.f32.mrb[11].mxu0  ;;  %v1578_v10 = vpop.f32.mrb[11].mxu1 }
 0x221   :  { %v1234_v8 = vadd.f32 %v1554_v2, %v1471_v63 }
 0x223   :  { %v1274_v11 = vadd.f32 %v1576_v5, %v1234_v8 }
 0x23d   :  { %v1596_v12 = vpop.f32.mrb[12].mxu0  ;;  %v1618_v13 = vpop.f32.mrb[12].mxu1 }
 0x23e   :  { %v1597_v14 = vpop.f32.mrb[13].mxu0  ;;  %v1619_v16 = vpop.f32.mrb[13].mxu1 }
 0x23f   :  { %v1598_v15 = vadd.f32 %v1597_v14, %v1596_v12  ;;  %v1599_v17 = vpop.f32.mrb[14].mxu0  ;;  %v1620_v18 = vadd.f32 %v1619_v16, %v1618_v13  ;;  %v1621_v19 = vpop.f32.mrb[14].mxu1 }
 0x240   :  { %v1600_v20 = vpop.f32.mrb[15].mxu0  ;;  %v1622_v21 = vpop.f32.mrb[15].mxu1 }
 0x241   :  { %v1314_v9 = vadd.f32 %v1598_v15, %v1274_v11 }
 0x243   :  { %v1354_v22 = vadd.f32 %v1620_v18, %v1314_v9 }
 0x245   :  { %v1371_v23 = vrot.slane %v1354_v22, 4 }
 0x247   :  { %v1372_v24 = vmax.f32 %v1354_v22, %v1371_v23 }
 0x249   :  { %v1373_v25 = vrot.slane %v1372_v24, 2 }
 0x24b   :  { %v1374_v26 = vmax.f32 %v1372_v24, %v1373_v25 }
 0x24d   :  { %v1375_v27 = vrot.slane %v1374_v26, 1 }
 0x24f   :  { %v1376_v28 = vmax.f32 %v1374_v26, %v1375_v27 }
 0x251   :  { %v1377_v29 = vsub.f32 %v1354_v22, %v1376_v28 }
 0x253   :  { %v1378_v30 = vmul.f32 1.442695, %v1377_v29 }
 0x255   :  { %1698 = vpow2.f32 %v1378_v30 }
 0x25f   :  { %v1699_v31 = vpop.eup %1698 }
 0x260   :  { %v1381_v32 = vrot.slane %v1699_v31, 4 }
 0x262   :  { %v1382_v33 = vadd.f32 %v1699_v31, %v1381_v32 }
 0x264   :  { %v1383_v34 = vrot.slane %v1382_v33, 2 }
 0x266   :  { %v1384_v35 = vadd.f32 %v1383_v34, %v1382_v33 }
 0x268   :  { %v1385_v36 = vrot.slane %v1384_v35, 1 }
 0x26a   :  { %v1386_v37 = vadd.f32 %v1385_v36, %v1384_v35 }
 0x26c   :  { %1700 = vrcp.f32 %v1386_v37 }
 0x276   :  { %v1701_v39 = vpop.eup %1700 }
 0x277   :  { %v1388_v0 = vmul.f32 %v1701_v39, %v1699_v31 }
 0x279   :  { %1389 = vst [vmem:[#allocation10] sm:$0xff] %v1388_v0 }
 0x27a   :  { %1801 = shalt.err (!%p1798_p8)
}
 0x27b   :  { %s1802_s21 = scalar_lea.hbm %s1958_s5, 128 }
 0x27c   :  { %p1803_p9 = scmp.ne.s32.totalorder %s1958_s5, %s1802_s21  ;;  %p1806_p10 = scmp.lt.u32.totalorder %s1802_s21, %s1958_s5 }
 0x27e   :  { %p1808_p11 = pnand %p1806_p10, %p1803_p9 }
 0x280   :  { %1811 = shalt.err (!%p1808_p11)
}
 0x281   :  { %1399 = dma.vmem_to_hbm [thread:$0]  %s1397_s1, 128, %s1958_s5, [#allocation4]  }
 0x282   :  { %1818 = dma.done.wait [#allocation4], 128  }
 0x283   :  { %1819 = vsyncadd [#allocation4], 4294967168 }
 0x284   :  { %1403 = vsyncpa [#allocation3], 1 }
 0x285   :  { %1404 = vsyncpa [#allocation6], 1 }
 0x286   :  { %1405 = vsyncpa [#allocation9], 1 }
 0x287   :  { %1406 = vsyncpa [#allocation4], 1 }

</bundles_post_ra>
